<compile_context>
chip_gen: v6e
topology: v6e:2x2x1
jax: 0.10.0
libtpu: 0.0.40
codegen_flags: <defaults>
</compile_context>

<pallas_src>
import jax
import jax.numpy as jnp
from jax.experimental import pallas as pl
from jax.experimental.pallas import tpu as pltpu


def _delay_kernel(buf_ref, x_ref, out_ref, newbuf_ref):
    # buf_ref:    (C, D)  previous delay-line contents
    # x_ref:      (C, T)  new input block
    # out_ref:    (C, T)  delayed output (cat-promoted dtype)
    # newbuf_ref: (C, D)  updated delay-line contents (buf dtype)
    d = buf_ref.shape[-1]
    t = x_ref.shape[-1]
    if d <= t:
        # Typical streaming case: out = [old buf | head of x], state = tail of x.
        out_ref[:, :d] = buf_ref[...].astype(out_ref.dtype)
        if t > d:
            out_ref[:, d:] = x_ref[:, : t - d].astype(out_ref.dtype)
        newbuf_ref[...] = x_ref[:, t - d :].astype(newbuf_ref.dtype)
    else:
        # D > T: out comes entirely from old buf; new state mixes buf tail + x.
        out_ref[...] = buf_ref[:, :t].astype(out_ref.dtype)
        newbuf_ref[:, : d - t] = buf_ref[:, t:].astype(newbuf_ref.dtype)
        newbuf_ref[:, d - t :] = x_ref[...].astype(newbuf_ref.dtype)


def delayed_passthrough(delay_buf: jax.Array, x: jax.Array):
    """Returns (out, new_delay_buf). Caller threads new_delay_buf into the next call."""
    c, d = delay_buf.shape
    c2, t = x.shape
    assert c == c2, "channel mismatch between delay buffer and input"
    assert d >= 1, "delay_n_samples must be >= 1"

    # torch.cat promotes; torch then writes the tail back into the (fixed-dtype) buffer.
    out_dtype = jnp.result_type(delay_buf.dtype, x.dtype)
    buf_dtype = delay_buf.dtype

    # delay_buf (input 0) ↔ new_buf (output 1): always same shape/dtype.
    aliases = {0: 1}
    # x (input 1) ↔ out (output 0): only when dtypes match (shape always matches).
    if x.dtype == out_dtype:
        aliases[1] = 0

    out_shapes = (
        jax.ShapeDtypeStruct((c, t), out_dtype),
        jax.ShapeDtypeStruct((c, d), buf_dtype),
    )
    return pl.pallas_call(
        _delay_kernel,
        out_shape=out_shapes,
        grid=(1,),
        in_specs=[
            pl.BlockSpec((c, d), lambda i: (0, 0)),
            pl.BlockSpec((c, t), lambda i: (0, 0)),
        ],
        out_specs=(
            pl.BlockSpec((c, t), lambda i: (0, 0)),
            pl.BlockSpec((c, d), lambda i: (0, 0)),
        ),
        # Single grid step: all input DMAs complete before the body, body completes
        # before output writeback, so both aliases are free of WAR hazards.
        input_output_aliases=aliases,
        compiler_params=pltpu.CompilerParams(
            dimension_semantics=("parallel",),
            vmem_limit_bytes=32 * 1024 * 1024,
        ),
    )(delay_buf, x)


def _reference(delay_buf, x):
    full = jnp.concatenate([delay_buf, x], axis=-1)
    d = delay_buf.shape[-1]
    return full[:, :-d], full[:, -d:]


if __name__ == "__main__":
    key = jax.random.PRNGKey(0)
    in_ch = 2
    delay_n_samples = 4
    n_samples = 16

    # Module inits delay_buf to zeros.
    delay_buf = jnp.zeros((in_ch, delay_n_samples), dtype=jnp.float32)

    k1, k2 = jax.random.split(key)
    x1 = jax.random.normal(k1, (in_ch, n_samples), dtype=jnp.float32)
    x2 = jax.random.normal(k2, (in_ch, n_samples), dtype=jnp.float32)

    # References computed up front (robust even if the caller donates state buffers).
    ref_out1, ref_buf1 = _reference(delay_buf, x1)
    ref_out2, ref_buf2 = _reference(ref_buf1, x2)

    # Call 1
    out1, buf1 = delayed_passthrough(delay_buf, x1)
    out1, buf1 = jax.block_until_ready((out1, buf1))

    # Call 2 (exercises the carried state, like calling the nn.Module twice)
    out2, buf2 = delayed_passthrough(buf1, x2)
    out2, buf2 = jax.block_until_ready((out2, buf2))

    assert out1.shape == (in_ch, n_samples) and buf1.shape == (in_ch, delay_n_samples)
    assert out1.dtype == jnp.result_type(delay_buf.dtype, x1.dtype)
    assert buf1.dtype == delay_buf.dtype
    assert jnp.allclose(out1, ref_out1)
    assert jnp.allclose(buf1, ref_buf1)
    assert jnp.allclose(out2, ref_out2)
    assert jnp.allclose(buf2, ref_buf2)

    print("KERNEL_OK")
</pallas_src>

<mosaic_0001>
module attributes {stable_mosaic.version = 11 : i64} {
  func.func @_delay_kernel(%arg0: i32, %arg1: memref<2x4xf32, #tpu.memory_space<vmem>>, %arg2: memref<2x16xf32, #tpu.memory_space<vmem>>, %arg3: memref<2x16xf32, #tpu.memory_space<vmem>>, %arg4: memref<2x4xf32, #tpu.memory_space<vmem>>) attributes {dimension_semantics = [#tpu.dimension_semantics<parallel>], iteration_bounds = array<i64: 1>, scalar_prefetch = 0 : i64, scratch_operands = 0 : i64, tpu.core_type = #tpu.core_type<tc>, window_params = [{pipeline_mode = #tpu.pipeline_mode<synchronous>, transform_indices = @transform_0, window_bounds = array<i64: 2, 4>}, {pipeline_mode = #tpu.pipeline_mode<synchronous>, transform_indices = @transform_1, window_bounds = array<i64: 2, 16>}, {pipeline_mode = #tpu.pipeline_mode<synchronous>, transform_indices = @transform_2, window_bounds = array<i64: 2, 16>}, {pipeline_mode = #tpu.pipeline_mode<synchronous>, transform_indices = @transform_3, window_bounds = array<i64: 2, 4>}]} {
    %c0 = arith.constant 0 : index
    %c0_0 = arith.constant 0 : index
    %0 = vector.load %arg1[%c0, %c0_0] : memref<2x4xf32, #tpu.memory_space<vmem>>, vector<2x4xf32>
    %c0_1 = arith.constant 0 : index
    %c0_2 = arith.constant 0 : index
    %1 = vector.load %arg3[%c0_1, %c0_2] : memref<2x16xf32, #tpu.memory_space<vmem>>, vector<2x4xf32>
    tpu.vector_store %arg3[%c0_1, %c0_2], %0 {strides = array<i32>} : memref<2x16xf32, #tpu.memory_space<vmem>>, vector<2x4xf32>,
    %c0_3 = arith.constant 0 : index
    %c0_4 = arith.constant 0 : index
    %2 = vector.load %arg2[%c0_3, %c0_4] : memref<2x16xf32, #tpu.memory_space<vmem>>, vector<2x12xf32>
    %c0_5 = arith.constant 0 : index
    %c4 = arith.constant 4 : index
    %3 = vector.load %arg3[%c0_5, %c4] : memref<2x16xf32, #tpu.memory_space<vmem>>, vector<2x12xf32>
    tpu.vector_store %arg3[%c0_5, %c4], %2 {strides = array<i32>} : memref<2x16xf32, #tpu.memory_space<vmem>>, vector<2x12xf32>,
    %c0_6 = arith.constant 0 : index
    %c12 = arith.constant 12 : index
    %4 = vector.load %arg2[%c0_6, %c12] : memref<2x16xf32, #tpu.memory_space<vmem>>, vector<2x4xf32>
    %c0_7 = arith.constant 0 : index
    %c0_8 = arith.constant 0 : index
    %5 = vector.load %arg4[%c0_7, %c0_8] : memref<2x4xf32, #tpu.memory_space<vmem>>, vector<2x4xf32>
    tpu.vector_store %arg4[%c0_7, %c0_8], %4 {strides = array<i32>} : memref<2x4xf32, #tpu.memory_space<vmem>>, vector<2x4xf32>,
    return
  }
  func.func @transform_0(%arg0: i32) -> (i32, i32) {
    %c0_i32 = arith.constant 0 : i32
    %c0_i32_0 = arith.constant 0 : i32
    %c0_i32_1 = arith.constant 0 : i32
    return %c0_i32, %c0_i32_0 : i32, i32
  }
  func.func @transform_1(%arg0: i32) -> (i32, i32) {
    %c0_i32 = arith.constant 0 : i32
    %c0_i32_0 = arith.constant 0 : i32
    %c0_i32_1 = arith.constant 0 : i32
    return %c0_i32, %c0_i32_0 : i32, i32
  }
  func.func @transform_2(%arg0: i32) -> (i32, i32) {
    %c0_i32 = arith.constant 0 : i32
    %c0_i32_0 = arith.constant 0 : i32
    %c0_i32_1 = arith.constant 0 : i32
    return %c0_i32, %c0_i32_0 : i32, i32
  }
  func.func @transform_3(%arg0: i32) -> (i32, i32) {
    %c0_i32 = arith.constant 0 : i32
    %c0_i32_0 = arith.constant 0 : i32
    %c0_i32_1 = arith.constant 0 : i32
    return %c0_i32, %c0_i32_0 : i32, i32
  }
}

</mosaic_0001>

<bundles_post_ra>
// kernel: tpu_custom_call.1
= control target key start
LH: loop header
LB: loop body
LE: loop exit
PB: predicated region body
PF: predicated region fallthrough
CT: control target
= control target key end

     0   :  { %9 = vsyncpa [#allocation3], 0  ;;  %s219_s0 = inlined_call_operand.hbm [shape: f32[2,4], index: 0, kind: input, shape index: {}, may-alias: {0,3}]   ;;  %s220_s1 = inlined_call_operand.hbm [shape: f32[2,16], index: 1, kind: input, shape index: {}, may-alias: {1,2}]   ;;  %s221_s2 = inlined_call_operand.hbm [shape: f32[2,16], index: 2, kind: output, shape index: {0}, may-alias: {1,2}]   ;;  %s222_s3 = inlined_call_operand.hbm [shape: f32[2,4], index: 3, kind: output, shape index: {1}, may-alias: {0,3}]  }
   0x1   :  { %10 = vsyncpa [#allocation6], 0 }
   0x2   :  { %11 = vsyncpa [#allocation4], 0 }
   0x3   :  { %12 = vsyncpa [#allocation9], 0  ;;  %s179_s12 = smov [#allocation2]   ;;  %s180_s14 = smov [#allocation5]  }
   0x4   :  { %s19_s13 = sshll.u32 %s179_s12, 4  ;;  %s29_s15 = sshll.u32 %s180_s14, 4  ;;  %s20_s13 = int_to_ptr.vmem [resolvable:$true] %s19_s13  ;;  %s30_s15 = int_to_ptr.vmem [resolvable:$true] %s29_s15 }
   0x5   :  { %s99_s16 = scalar_lea.vmem %s20_s13, 32  ;;  %p104_p1 = scmp.lt.s32.totalorder %s20_s13, %s20_s13 }
   0x6   :  { %p100_p0 = scmp.ne.s32.totalorder %s20_s13, %s99_s16  ;;  %p105_p2 = scmp.lt.s32.totalorder %s99_s16, %s99_s16 }
   0x8   :  { %p106_p3 = por %p105_p2, %p104_p1 }
   0xa   :  { %p107_p4 = pnand %p106_p3, %p100_p0 }
   0xc   :  { %110 = shalt.err (!%p107_p4)
}
   0xd   :  { %22 = dma.hbm_to_vmem [thread:$0]  %s219_s0, 32, %s20_s13, [#allocation3]  }
   0xe   :  { %s119_s19 = scalar_lea.vmem %s30_s15, 32  ;;  %p124_p6 = scmp.lt.s32.totalorder %s30_s15, %s30_s15 }
   0xf   :  { %p120_p5 = scmp.ne.s32.totalorder %s30_s15, %s119_s19  ;;  %p125_p7 = scmp.lt.s32.totalorder %s119_s19, %s119_s19 }
  0x11   :  { %p126_p8 = por %p125_p7, %p124_p6 }
  0x13   :  { %p127_p9 = pnand %p126_p8, %p120_p5 }
  0x15   :  { %130 = shalt.err (!%p127_p9)
}
  0x16   :  { %32 = dma.hbm_to_vmem [thread:$0]  %s220_s1, 32, %s30_s15, [#allocation6]  }
  0x17   :  { %171 = dma.done.wait [#allocation3], 32  }
  0x18   :  { %172 = vsyncadd [#allocation3], 4294967264 }
  0x19   :  { %173 = dma.done.wait [#allocation6], 32  }
  0x1a   :  { %174 = vsyncadd [#allocation6], 4294967264  ;;  %vm40_vm0 = vcmask 25600   ;;  %v42_v0 = vld [vmem:[#allocation5] sm:$0x3]  ;;  %s181_s22 = smov 4  }
  0x1b   :  { %v39_v1 = vld [vmem:[#allocation2] sm:$0x3]  ;;  %44 = vrot.lane.b32.xlu0 %v42_v0, %s181_s22  ;;  %v49_v2 = vld [vmem:[#allocation5] sm:$0x3]  ;;  %s182_s0 = smov 116   ;;  %s183_s23 = smov [#allocation7]  }
  0x1c   :  { %41 = vst.msk [vmem:[#allocation7] sm:$0x3] %vm40_vm0, %v39_v1  ;;  %s61_s24 = sshll.u32 %s183_s23, 4  ;;  %vm47_vm1 = vcmask 123936   ;;  %s184_s1 = smov [#allocation8]   ;;  %s62_s24 = int_to_ptr.vmem [resolvable:$true] %s61_s24 }
  0x1d   :  { %s71_s25 = sshll.u32 %s184_s1, 4  ;;  %s131_s26 = scalar_lea.vmem %s62_s24, 32  ;;  %s72_s25 = int_to_ptr.vmem [resolvable:$true] %s71_s25 }
  0x1e   :  { %p132_p10 = scmp.ne.s32.totalorder %s62_s24, %s131_s26  ;;  %p136_p11 = scmp.lt.s32.totalorder %s62_s24, %s62_s24 }
  0x1f   :  { %51 = vrot.lane.b32.xlu0 %v49_v2, %s182_s0  ;;  %p137_p12 = scmp.lt.s32.totalorder %s131_s26, %s131_s26 }
  0x21   :  { %p138_p13 = por %p137_p12, %p136_p11 }
  0x23   :  { %p139_p0 = pnand %p138_p13, %p132_p10 }
  0x8d   :  { %v45_v3 = vpop.permute.xlu0 %44 }
  0x8e   :  { %48 = vst.msk [vmem:[#allocation7] sm:$0x3] %vm47_vm1, %v45_v3 }
  0x8f   :  { %142 = shalt.err (!%p139_p0)
}
  0x90   :  { %64 = dma.vmem_to_hbm [thread:$0]  %s62_s24, 32, %s221_s2, [#allocation4]  }
  0x91   :  { %v52_v4 = vpop.permute.xlu0 %51  ;;  %s151_s29 = scalar_lea.vmem %s72_s25, 32  ;;  %p156_p2 = scmp.lt.s32.totalorder %s72_s25, %s72_s25 }
  0x92   :  { %54 = vst.msk [vmem:[#allocation8] sm:$0x3] %vm40_vm0, %v52_v4  ;;  %p152_p1 = scmp.ne.s32.totalorder %s72_s25, %s151_s29  ;;  %p157_p3 = scmp.lt.s32.totalorder %s151_s29, %s151_s29 }
  0x94   :  { %p158_p4 = por %p157_p3, %p156_p2 }
  0x96   :  { %p159_p5 = pnand %p158_p4, %p152_p1 }
  0x98   :  { %162 = shalt.err (!%p159_p5)
}
  0x99   :  { %74 = dma.vmem_to_hbm [thread:$0]  %s72_s25, 32, %s222_s3, [#allocation9]  }
  0x9a   :  { %175 = dma.done.wait [#allocation4], 32  }
  0x9b   :  { %176 = vsyncadd [#allocation4], 4294967264 }
  0x9c   :  { %177 = dma.done.wait [#allocation9], 32  }
  0x9d   :  { %178 = vsyncadd [#allocation9], 4294967264 }
  0x9e   :  { %81 = vsyncpa [#allocation3], 1 }
  0x9f   :  { %82 = vsyncpa [#allocation6], 1 }
  0xa0   :  { %83 = vsyncpa [#allocation4], 1 }
  0xa1   :  { %84 = vsyncpa [#allocation9], 1 }

</bundles_post_ra>
